<compile_context>
chip_gen: v7x
topology: tpu7x:2x2x1
jax: 0.10.0
libtpu: 0.0.40
codegen_flags: <defaults>
</compile_context>

<pallas_src>
import numpy as np
import jax
import jax.numpy as jnp
from jax.experimental import pallas as pl
from jax.experimental.pallas import tpu as pltpu


# ----------------------------------------------------------------------------
# Synthetic BART tree + the original tree-walk (pure Python glue, no torch).
# ----------------------------------------------------------------------------
class Node:
    def __init__(self, left=None, right=None, split_attribute_M=None,
                 split_value=None, posterior_mean=None):
        self.left = left
        self.right = right
        self.split_attribute_M = split_attribute_M
        self.split_value = split_value
        self.posterior_mean = posterior_mean


def inner_decisions(root, leafinfo, k):
    decisions_pairs = []
    all_paths = []
    leafinfos = leafinfo.copy()
    if root.left is None and root.right is None:
        return (decisions_pairs, [(k, root.posterior_mean, leafinfos)], k)
    decisions_pairs.append((k, root.split_attribute_M, root.split_value))
    leafinfos.append((k, -1))
    dec, paths, K = inner_decisions(root.left, leafinfos, k + 1)
    decisions_pairs.extend(dec)
    all_paths.extend(paths)
    leafinfos.pop()
    leafinfos.append((k, +1))
    dec, paths, K = inner_decisions(root.right, leafinfos, K + 1)
    decisions_pairs.extend(dec)
    all_paths.extend(paths)
    return (decisions_pairs, all_paths, K)


def build_nbart_params(input_dim, decisions, paths):
    """Deterministic weight construction mirroring NBART.set_connections_*."""
    D = len(decisions)          # inner decisions
    P = 1 + D                   # leaves (lin2 out features)
    assert len(paths) == P

    # lin1: weight (D, input_dim), bias (D,)
    w1 = np.zeros((D, input_dim), np.float32)
    b1 = np.zeros((D,), np.float32)
    dic = {}
    for i, (k, attr, val) in enumerate(decisions):
        dic[k] = i
        w1[i, int(attr)] = 1.0
        b1[i] = val

    # lin2: weight (P, D), bias (P,)
    w2 = np.zeros((P, D), np.float32)
    b2 = np.zeros((P,), np.float32)
    avgs = []
    for i, (_, avg, tuples) in enumerate(paths):
        avgs.append(avg)
        b2[i] = -len(tuples) + 1 / 2
        for (node_k, sign) in tuples:
            w2[i, dic[node_k]] = float(sign)

    # lin3: weight (1, P), bias (1,)
    w3 = (0.5 * np.asarray(avgs, np.float32)).reshape(1, -1)
    b3 = np.asarray(w3.sum(), np.float32).reshape(1,)
    return w1, b1, w2, b2, w3, b3


# ----------------------------------------------------------------------------
# Pallas kernel: full 3-layer NBART forward for one batch tile (batch on lanes).
# ----------------------------------------------------------------------------
def make_nbart_kernel(w1, b1, w2, b2, w3, b3, gamma1, gamma2):
    """Builds a kernel with the (static, tree-derived) weights baked in as
    compile-time constants; gamma1/gamma2 are folded into the weights."""
    w1 = np.asarray(w1, np.float32)
    w2 = np.asarray(w2, np.float32)
    D, F = w1.shape
    P = w2.shape[0]

    # Host-side constant folding of the activation gains.
    w1g = gamma1 * w1
    b1g = gamma1 * np.asarray(b1, np.float32)
    w2g = gamma2 * w2
    b2g = gamma2 * np.asarray(b2, np.float32)
    w3f = np.asarray(w3, np.float32).reshape(-1)
    b3f = float(np.asarray(b3, np.float32).reshape(()))

    def kernel(xt_ref, o_ref):
        # xt_ref: (F, bm) with the batch on the lane axis; o_ref: (1, bm).
        xrows = [xt_ref[f:f + 1, :] for f in range(F)]          # each (1, bm)

        # Layer 1 + tanh (gamma1 folded).  W1 is one-hot per decision, so
        # skipping zero coefficients makes this a row-select + bias on the VPU.
        t1 = []
        for d in range(D):
            acc = jnp.full_like(xrows[0], b1g[d])
            for f in range(F):
                c = float(w1g[d, f])
                if c != 0.0:
                    acc = acc + c * xrows[f]
            t1.append(jnp.tanh(acc))                            # EUP

        # Layer 2 + tanh (gamma2 folded).  W2 entries are (+/- gamma2, 0).
        t2 = []
        for p in range(P):
            acc = jnp.full_like(xrows[0], b2g[p])
            for d in range(D):
                c = float(w2g[p, d])
                if c != 0.0:
                    acc = acc + c * t1[d]
            t2.append(jnp.tanh(acc))                            # EUP

        # Layer 3: weighted sum over leaves -> lane-dense (1, bm) store.
        out = jnp.full_like(xrows[0], b3f)
        for p in range(P):
            c = float(w3f[p])
            if c != 0.0:
                out = out + c * t2[p]
        o_ref[...] = out

    return kernel, (D, F, P)


def nbart_forward(x, w1, b1, w2, b2, w3, b3, gamma1=100.0, gamma2=1.0,
                  block_m=1024):
    """NBART forward: (B, F) f32 -> (B, 1) f32."""
    x = jnp.asarray(x, jnp.float32)
    B, F_in = x.shape

    kernel, (D, F, P) = make_nbart_kernel(w1, b1, w2, b2, w3, b3,
                                          gamma1, gamma2)
    assert F == F_in

    def round_up(a, m):
        return ((a + m - 1) // m) * m

    # Lane-aligned batch tile, capped by the (padded) batch itself.
    B128 = round_up(B, 128)
    bm = round_up(min(int(block_m), B128), 128)
    # Prefer >= 2 grid steps when the batch allows it (keeps both v7x
    # TensorCores busy through the "parallel" grid axis); neutral on v5e/v6e.
    if B128 // bm < 2 and B128 >= 256:
        bm = round_up(B128 // 2, 128)
    grid_m = (B128 + bm - 1) // bm
    B_pad = grid_m * bm

    # Layout plumbing (host side): batch on the lane axis, zero-padded to the
    # tile boundary.  Output comes back lane-dense as (1, B_pad).
    x_t = jnp.zeros((F, B_pad), jnp.float32).at[:, :B].set(x.T)

    cost = pl.CostEstimate(
        flops=2 * B_pad * (D * F + D * P + P),
        transcendentals=B_pad * (D + P),
        bytes_accessed=4 * B_pad * (F + 1),
    )

    out = pl.pallas_call(
        kernel,
        out_shape=jax.ShapeDtypeStruct((1, B_pad), jnp.float32),
        grid_spec=pltpu.PrefetchScalarGridSpec(
            num_scalar_prefetch=0,
            grid=(grid_m,),
            in_specs=[pl.BlockSpec((F, bm), lambda i: (0, i))],
            out_specs=pl.BlockSpec((1, bm), lambda i: (0, i)),
        ),
        compiler_params=pltpu.CompilerParams(
            dimension_semantics=("parallel",)),
        cost_estimate=cost,
    )(x_t)

    return out[0, :B].reshape(B, 1)


def nbart_reference(x, w1, b1, w2, b2, w3, b3, gamma1=100.0, gamma2=1.0):
    h1 = x @ w1.T + b1
    h2 = jnp.tanh(gamma1 * h1) @ w2.T + b2
    return jnp.tanh(gamma2 * h2) @ w3.T + b3


# ----------------------------------------------------------------------------
if __name__ == "__main__":
    # Small deterministic BART tree: 3 inner nodes -> D=3, leaves P=4.
    root = Node(
        split_attribute_M=1, split_value=0.3,
        left=Node(
            split_attribute_M=2, split_value=-0.1,
            left=Node(posterior_mean=0.5),
            right=Node(posterior_mean=-0.25),
        ),
        right=Node(
            split_attribute_M=3, split_value=0.4,
            left=Node(posterior_mean=1.25),
            right=Node(posterior_mean=-0.75),
        ),
    )
    decisions, paths, _ = inner_decisions(root, [], 0)

    input_dim = 4
    gamma1, gamma2 = 100.0, 1.0
    w1, b1, w2, b2, w3, b3 = build_nbart_params(input_dim, decisions, paths)

    w1j, b1j = jnp.asarray(w1), jnp.asarray(b1)
    w2j, b2j = jnp.asarray(w2), jnp.asarray(b2)
    w3j, b3j = jnp.asarray(w3), jnp.asarray(b3)

    key0, key1 = jax.random.split(jax.random.PRNGKey(0))

    # Check 1: small batch (single lane-padded tile).
    B = 16
    x = jax.random.normal(key0, (B, input_dim), dtype=jnp.float32)
    out = jax.block_until_ready(
        nbart_forward(x, w1, b1, w2, b2, w3, b3, gamma1, gamma2))
    ref = nbart_reference(x, w1j, b1j, w2j, b2j, w3j, b3j, gamma1, gamma2)
    assert out.shape == (B, 1), out.shape
    np.testing.assert_allclose(np.asarray(out), np.asarray(ref),
                               rtol=1e-4, atol=1e-4)

    # Check 2: non-multiple batch size, multi-step grid (exercises padding and
    # the >=2 parallel grid steps path).
    B2 = 300
    x2 = jax.random.normal(key1, (B2, input_dim), dtype=jnp.float32)
    out2 = jax.block_until_ready(
        nbart_forward(x2, w1, b1, w2, b2, w3, b3, gamma1, gamma2))
    ref2 = nbart_reference(x2, w1j, b1j, w2j, b2j, w3j, b3j, gamma1, gamma2)
    assert out2.shape == (B2, 1), out2.shape
    np.testing.assert_allclose(np.asarray(out2), np.asarray(ref2),
                               rtol=1e-4, atol=1e-4)

    print("KERNEL_OK")
</pallas_src>

<mosaic_0001>
module attributes {stable_mosaic.version = 11 : i64} {
  func.func @kernel(%arg0: i32, %arg1: memref<4x128xf32, #tpu.memory_space<vmem>>, %arg2: memref<1x128xf32, #tpu.memory_space<vmem>>) attributes {dimension_semantics = [#tpu.dimension_semantics<parallel>], iteration_bounds = array<i64: 1>, scalar_prefetch = 0 : i64, scratch_operands = 0 : i64, tpu.core_type = #tpu.core_type<tc>, window_params = [{transform_indices = @transform_0, window_bounds = array<i64: 4, 128>}, {transform_indices = @transform_1, window_bounds = array<i64: 1, 128>}]} {
    %c1 = arith.constant 1 : index
    %c0 = arith.constant 0 : index
    %0 = vector.load %arg1[%c1, %c0] : memref<4x128xf32, #tpu.memory_space<vmem>>, vector<1x128xf32>
    %c2 = arith.constant 2 : index
    %c0_0 = arith.constant 0 : index
    %1 = vector.load %arg1[%c2, %c0_0] : memref<4x128xf32, #tpu.memory_space<vmem>>, vector<1x128xf32>
    %c3 = arith.constant 3 : index
    %c0_1 = arith.constant 0 : index
    %2 = vector.load %arg1[%c3, %c0_1] : memref<4x128xf32, #tpu.memory_space<vmem>>, vector<1x128xf32>
    %cst = arith.constant 30.0000019 : f32
    %3 = vector.broadcast %cst : f32 to vector<1x128xf32>
    %cst_2 = arith.constant 1.000000e+02 : f32
    %4 = vector.broadcast %cst_2 : f32 to vector<1x128xf32>
    %5 = arith.mulf %4, %0 : vector<1x128xf32>
    %6 = arith.addf %3, %5 : vector<1x128xf32>
    %7 = math.tanh %6 : vector<1x128xf32>
    %cst_3 = arith.constant -1.000000e+01 : f32
    %8 = vector.broadcast %cst_3 : f32 to vector<1x128xf32>
    %cst_4 = arith.constant 1.000000e+02 : f32
    %9 = vector.broadcast %cst_4 : f32 to vector<1x128xf32>
    %10 = arith.mulf %9, %1 : vector<1x128xf32>
    %11 = arith.addf %8, %10 : vector<1x128xf32>
    %12 = math.tanh %11 : vector<1x128xf32>
    %cst_5 = arith.constant 4.000000e+01 : f32
    %13 = vector.broadcast %cst_5 : f32 to vector<1x128xf32>
    %cst_6 = arith.constant 1.000000e+02 : f32
    %14 = vector.broadcast %cst_6 : f32 to vector<1x128xf32>
    %15 = arith.mulf %14, %2 : vector<1x128xf32>
    %16 = arith.addf %13, %15 : vector<1x128xf32>
    %17 = math.tanh %16 : vector<1x128xf32>
    %cst_7 = arith.constant -1.500000e+00 : f32
    %18 = vector.broadcast %cst_7 : f32 to vector<1x128xf32>
    %cst_8 = arith.constant -1.000000e+00 : f32
    %19 = vector.broadcast %cst_8 : f32 to vector<1x128xf32>
    %20 = arith.mulf %19, %7 : vector<1x128xf32>
    %21 = arith.addf %18, %20 : vector<1x128xf32>
    %cst_9 = arith.constant -1.000000e+00 : f32
    %22 = vector.broadcast %cst_9 : f32 to vector<1x128xf32>
    %23 = arith.mulf %22, %12 : vector<1x128xf32>
    %24 = arith.addf %21, %23 : vector<1x128xf32>
    %25 = math.tanh %24 : vector<1x128xf32>
    %cst_10 = arith.constant -1.500000e+00 : f32
    %26 = vector.broadcast %cst_10 : f32 to vector<1x128xf32>
    %cst_11 = arith.constant -1.000000e+00 : f32
    %27 = vector.broadcast %cst_11 : f32 to vector<1x128xf32>
    %28 = arith.mulf %27, %7 : vector<1x128xf32>
    %29 = arith.addf %26, %28 : vector<1x128xf32>
    %cst_12 = arith.constant 1.000000e+00 : f32
    %30 = vector.broadcast %cst_12 : f32 to vector<1x128xf32>
    %31 = arith.mulf %30, %12 : vector<1x128xf32>
    %32 = arith.addf %29, %31 : vector<1x128xf32>
    %33 = math.tanh %32 : vector<1x128xf32>
    %cst_13 = arith.constant -1.500000e+00 : f32
    %34 = vector.broadcast %cst_13 : f32 to vector<1x128xf32>
    %cst_14 = arith.constant 1.000000e+00 : f32
    %35 = vector.broadcast %cst_14 : f32 to vector<1x128xf32>
    %36 = arith.mulf %35, %7 : vector<1x128xf32>
    %37 = arith.addf %34, %36 : vector<1x128xf32>
    %cst_15 = arith.constant -1.000000e+00 : f32
    %38 = vector.broadcast %cst_15 : f32 to vector<1x128xf32>
    %39 = arith.mulf %38, %17 : vector<1x128xf32>
    %40 = arith.addf %37, %39 : vector<1x128xf32>
    %41 = math.tanh %40 : vector<1x128xf32>
    %cst_16 = arith.constant -1.500000e+00 : f32
    %42 = vector.broadcast %cst_16 : f32 to vector<1x128xf32>
    %cst_17 = arith.constant 1.000000e+00 : f32
    %43 = vector.broadcast %cst_17 : f32 to vector<1x128xf32>
    %44 = arith.mulf %43, %7 : vector<1x128xf32>
    %45 = arith.addf %42, %44 : vector<1x128xf32>
    %cst_18 = arith.constant 1.000000e+00 : f32
    %46 = vector.broadcast %cst_18 : f32 to vector<1x128xf32>
    %47 = arith.mulf %46, %17 : vector<1x128xf32>
    %48 = arith.addf %45, %47 : vector<1x128xf32>
    %49 = math.tanh %48 : vector<1x128xf32>
    %cst_19 = arith.constant 3.750000e-01 : f32
    %50 = vector.broadcast %cst_19 : f32 to vector<1x128xf32>
    %cst_20 = arith.constant 2.500000e-01 : f32
    %51 = vector.broadcast %cst_20 : f32 to vector<1x128xf32>
    %52 = arith.mulf %51, %25 : vector<1x128xf32>
    %53 = arith.addf %50, %52 : vector<1x128xf32>
    %cst_21 = arith.constant -1.250000e-01 : f32
    %54 = vector.broadcast %cst_21 : f32 to vector<1x128xf32>
    %55 = arith.mulf %54, %33 : vector<1x128xf32>
    %56 = arith.addf %53, %55 : vector<1x128xf32>
    %cst_22 = arith.constant 6.250000e-01 : f32
    %57 = vector.broadcast %cst_22 : f32 to vector<1x128xf32>
    %58 = arith.mulf %57, %41 : vector<1x128xf32>
    %59 = arith.addf %56, %58 : vector<1x128xf32>
    %cst_23 = arith.constant -3.750000e-01 : f32
    %60 = vector.broadcast %cst_23 : f32 to vector<1x128xf32>
    %61 = arith.mulf %60, %49 : vector<1x128xf32>
    %62 = arith.addf %59, %61 : vector<1x128xf32>
    %c0_24 = arith.constant 0 : index
    %c0_25 = arith.constant 0 : index
    %63 = vector.load %arg2[%c0_24, %c0_25] : memref<1x128xf32, #tpu.memory_space<vmem>>, vector<1x128xf32>
    tpu.vector_store %arg2[%c0_24, %c0_25], %62 {strides = array<i32>} : memref<1x128xf32, #tpu.memory_space<vmem>>, vector<1x128xf32>,
    return
  }
  func.func @transform_0(%arg0: i32) -> (i32, i32) {
    %c0_i32 = arith.constant 0 : i32
    %c0_i32_0 = arith.constant 0 : i32
    return %c0_i32, %arg0 : i32, i32
  }
  func.func @transform_1(%arg0: i32) -> (i32, i32) {
    %c0_i32 = arith.constant 0 : i32
    %c0_i32_0 = arith.constant 0 : i32
    return %c0_i32, %arg0 : i32, i32
  }
}

</mosaic_0001>

<bundles_post_ra>
// kernel: tpu_custom_call.1
= control target key start
LH: loop header
LB: loop body
LE: loop exit
PB: predicated region body
PF: predicated region fallthrough
CT: control target
= control target key end

     0   :  { %6 = vsyncpa [#allocation3], 0  ;;  %s170_s0 = inlined_call_operand.hbm [shape: f32[4,128], index: 0, kind: input, shape index: {}]   ;;  %s171_s1 = inlined_call_operand.hbm [shape: f32[1,128], index: 1, kind: output, shape index: {}]  }
   0x1   :  { %7 = vsyncpa [#allocation4], 0  ;;  %s134_s6 = smov [#allocation2]   ;;  %s86_s10 = scalar_lea.hbm %s170_s0, 64 }
   0x2   :  { %s14_s7 = sshll.u32 %s134_s6, 4  ;;  %p87_p0 = scmp.ne.s32.totalorder %s170_s0, %s86_s10  ;;  %s15_s7 = int_to_ptr.vmem [resolvable:$true] %s14_s7 }
   0x3   :  { %p90_p1 = scmp.lt.u32.totalorder %s86_s10, %s170_s0 }
   0x5   :  { %p92_p2 = pnand %p90_p1, %p87_p0 }
   0x7   :  { %95 = shalt.err (!%p92_p2)
}
   0x8   :  { %s96_s15 = scalar_lea.vmem %s15_s7, 64  ;;  %p101_p4 = scmp.lt.s32.totalorder %s15_s7, %s15_s7 }
   0x9   :  { %p97_p3 = scmp.ne.s32.totalorder %s15_s7, %s96_s15  ;;  %p102_p5 = scmp.lt.s32.totalorder %s96_s15, %s96_s15 }
   0xb   :  { %p103_p6 = por %p102_p5, %p101_p4 }
   0xd   :  { %p104_p7 = pnand %p103_p6, %p97_p3 }
   0xf   :  { %107 = shalt.err (!%p104_p7)
}
  0x10   :  { %17 = dma.hbm_to_vmem [thread:$0]  %s170_s0, 64, %s15_s7, [#allocation3]  }
  0x11   :  { %130 = dma.done.wait [#allocation3], 64  }
  0x12   :  { %131 = vsyncadd [#allocation3], 4294967232  ;;  %v21_v0 = vld [vmem:[#allocation2 + $0x1] sm:$0x1]  ;;  %v22_v1 = vld [vmem:[#allocation2 + $0x2] sm:$0x1] }
  0x13   :  { %v23_v2 = vld [vmem:[#allocation2 + $0x3] sm:$0x1]  ;;  %v24_v3 = vmul.f32 100.0, %v21_v0  ;;  %v27_v4 = vmul.f32 100.0, %v22_v1  ;;  %s135_s0 = smov [#allocation5]  }
  0x14   :  { %v30_v5 = vmul.f32 100.0, %v23_v2  ;;  %s61_s18 = sshll.u32 %s135_s0, 4  ;;  %s62_s18 = int_to_ptr.vmem [resolvable:$true] %s61_s18 }
  0x15   :  { %v25_v6 = vadd.f32 30.000002, %v24_v3  ;;  %v28_v7 = vadd.f32 -10.0, %v27_v4  ;;  %s108_s19 = scalar_lea.vmem %s62_s18, 16  ;;  %s112_s20 = scalar_lea.vmem %s62_s18, 32 }
  0x16   :  { %v31_v8 = vadd.f32 40.0, %v30_v5  ;;  %p109_p8 = scmp.ne.s32.totalorder %s62_s18, %s108_s19  ;;  %p113_p9 = scmp.lt.s32.totalorder %s62_s18, %s62_s18 }
  0x17   :  { %72 = vtanh.f32 %v25_v6  ;;  %p114_p10 = scmp.lt.s32.totalorder %s112_s20, %s108_s19 }
  0x18   :  { %74 = vtanh.f32 %v28_v7 }
  0x19   :  { %76 = vtanh.f32 %v31_v8  ;;  %p115_p11 = por %p114_p10, %p113_p9 }
  0x1b   :  { %p116_p12 = pnand %p115_p11, %p109_p8 }
  0x21   :  { %v73_v9 = vpop.eup %72 }
  0x22   :  { %v75_v10 = vpop.eup %74  ;;  %v33_v11 = vmul.f32 -1.0, %v73_v9  ;;  %v40_v12 = vadd.f32 -1.5, %v73_v9 }
  0x23   :  { %v77_v13 = vpop.eup %76  ;;  %v35_v14 = vmul.f32 -1.0, %v75_v10 }
  0x24   :  { %v34_v15 = vadd.f32 -1.5, %v33_v11  ;;  %v41_v16 = vmul.f32 -1.0, %v77_v13  ;;  %v44_v17 = vadd.f32 %v77_v13, %v40_v12 }
  0x26   :  { %v36_v18 = vadd.f32 %v35_v14, %v34_v15  ;;  %v38_v19 = vadd.f32 %v75_v10, %v34_v15  ;;  %v42_v20 = vadd.f32 %v41_v16, %v40_v12  ;;  %78 = vtanh.f32 %v44_v17 }
  0x28   :  { %80 = vtanh.f32 %v36_v18 }
  0x29   :  { %82 = vtanh.f32 %v38_v19 }
  0x2a   :  { %84 = vtanh.f32 %v42_v20 }
  0x30   :  { %v79_v21 = vpop.eup %78 }
  0x31   :  { %v52_v30 = vmul.f32 -0.375, %v79_v21 }
  0x32   :  { %v81_v22 = vpop.eup %80 }
  0x33   :  { %v83_v23 = vpop.eup %82  ;;  %v46_v24 = vmul.f32 0.25, %v81_v22 }
  0x34   :  { %v85_v25 = vpop.eup %84  ;;  %v48_v26 = vmul.f32 -0.125, %v83_v23 }
  0x35   :  { %v47_v27 = vadd.f32 0.375, %v46_v24  ;;  %v50_v28 = vmul.f32 0.625, %v85_v25 }
  0x37   :  { %v49_v29 = vadd.f32 %v48_v26, %v47_v27 }
  0x39   :  { %v51_v31 = vadd.f32 %v50_v28, %v49_v29 }
  0x3b   :  { %v53_v32 = vadd.f32 %v52_v30, %v51_v31 }
  0x3d   :  { %54 = vst [vmem:[#allocation5] sm:$0x1] %v53_v32 }
  0x3e   :  { %119 = shalt.err (!%p116_p12)
}
  0x3f   :  { %s120_s23 = scalar_lea.hbm %s171_s1, 16 }
  0x40   :  { %p121_p13 = scmp.ne.s32.totalorder %s171_s1, %s120_s23  ;;  %p124_p0 = scmp.lt.u32.totalorder %s120_s23, %s171_s1 }
  0x42   :  { %p126_p1 = pnand %p124_p0, %p121_p13 }
  0x44   :  { %129 = shalt.err (!%p126_p1)
}
  0x45   :  { %64 = dma.vmem_to_hbm [thread:$0]  %s62_s18, 16, %s171_s1, [#allocation4]  }
  0x46   :  { %132 = dma.done.wait [#allocation4], 16  }
  0x47   :  { %133 = vsyncadd [#allocation4], 4294967280 }
  0x48   :  { %68 = vsyncpa [#allocation3], 1 }
  0x49   :  { %69 = vsyncpa [#allocation4], 1 }

</bundles_post_ra>
